<compile_context>
chip_gen: v6e
topology: v6e:2x2x1
jax: 0.10.0
libtpu: 0.0.40
codegen_flags: <defaults>
</compile_context>

<pallas_src>
import functools

import jax
import jax.numpy as jnp
from jax.experimental import pallas as pl
from jax.experimental.pallas import tpu as pltpu


def _round_up(a: int, b: int) -> int:
    return (a + b - 1) // b * b


def _choose_tm(M: int, tm_target: int):
    """Pick an M-tile.

    Prefers the largest multiple-of-8 tile <= tm_target that divides M exactly
    (no padding, no wasted rows).  Caps the tile at M // 2 so the grid has at
    least 2 steps (keeps both v7x TensorCores busy).  Falls back to padding M
    when no reasonable divisor exists.
    Returns (tm_eff, M_pad).
    """
    cap = min(tm_target, M)
    if M >= 16:
        cap = min(cap, M // 2)
    cap = max(8, (cap // 8) * 8)
    # Exact divisor search (trace-time only; <= tm/8 iterations).
    for d in range(cap, 7, -8):
        if M % d == 0:
            if 2 * d >= cap:          # only accept if not much smaller than cap
                return d, M
            break
    return cap, _round_up(M, cap)


def _patch_embed_matmul_kernel(x_ref, w_ref, b_ref, o_ref):
    # x_ref: (tm, K) bf16, w_ref: (K, E_pad) bf16 (VMEM-resident),
    # b_ref: (1, E_pad) f32 (VMEM-resident), o_ref: (tm, E_pad) out_dtype.
    acc = jnp.dot(x_ref[...], w_ref[...], preferred_element_type=jnp.float32)
    o_ref[...] = (acc + b_ref[...]).astype(o_ref.dtype)


def patch_embed_voxel(x, weight, bias, patch_size=4, tm=1024,
                      compute_dtype=jnp.bfloat16, out_dtype=jnp.bfloat16):
    """Pallas implementation of PatchEmbed_Voxel.forward.

    Args:
      x:      (B, C, X, Y, Z) array (any float/int dtype).
      weight: (E, C, p, p, p) Conv3d weight (PyTorch layout).
      bias:   (E,) Conv3d bias.
      patch_size: p (kernel == stride).
      tm:     target M-tile (rows of B*num_patches per grid step).
      compute_dtype: MXU operand dtype.  bf16 (default) halves HBM read
        traffic; accumulation and bias-add stay f32.
      out_dtype: output store dtype.  bf16 (default) halves HBM write traffic
        (the dominant term); pass jnp.float32 for PyTorch-exact f32 output.

    Returns:
      (B, num_patches, E) out_dtype, num_patches = (X//p)*(Y//p)*(Z//p).
    """
    p = patch_size
    B, C, X, Y, Z = x.shape
    E = weight.shape[0]
    Xp, Yp, Zp = X // p, Y // p, Z // p
    num_patches = Xp * Yp * Zp
    K = C * p * p * p
    M = B * num_patches

    # --- im2col: one fused XLA copy (cast + transpose + reshape) in bf16. ---
    # Patch ordering is x-major, then y, then z, matching PyTorch's flatten(2);
    # K is flattened in (c, kx, ky, kz) order to match the conv-weight reshape.
    patches = x.astype(compute_dtype).reshape(B, C, Xp, p, Yp, p, Zp, p)
    patches = patches.transpose(0, 2, 4, 6, 1, 3, 5, 7)  # (B,Xp,Yp,Zp,C,p,p,p)
    x2d = patches.reshape(M, K)

    # Conv weight (E, C, p, p, p) -> (K, E) for a right-multiply matmul.
    w2d = weight.astype(compute_dtype).reshape(E, K).T
    b2d = bias.astype(jnp.float32).reshape(1, E)

    # Lane-dense output: pad E up to a multiple of 128 (avoids masked vst and
    # wasted MXU result columns).  No-op when E is already 128-aligned.
    E_pad = _round_up(E, 128)
    if E_pad != E:
        w2d = jnp.pad(w2d, ((0, 0), (0, E_pad - E)))
        b2d = jnp.pad(b2d, ((0, 0), (0, E_pad - E)))

    # Big, preferably M-divisible, M tile; pad M only as a last resort.
    tm_eff, M_pad = _choose_tm(M, tm)
    if M_pad != M:
        x2d = jnp.pad(x2d, ((0, M_pad - M), (0, 0)))

    grid = (M_pad // tm_eff,)
    out_itemsize = jnp.dtype(out_dtype).itemsize
    cd_itemsize = jnp.dtype(compute_dtype).itemsize

    # Raise the scoped-VMEM limit only when the double-buffered tiles would
    # exceed the most restrictive default (v5e: 16 MiB).  Not needed at the
    # default tm=1024 / bf16 output.
    vmem_need = (2 * tm_eff * K * cd_itemsize            # x tile, double-buffered
                 + 2 * tm_eff * E_pad * out_itemsize     # out tile, double-buffered
                 + 2 * K * E_pad * cd_itemsize           # resident weight (x2 buf)
                 + 2 * E_pad * 4)                        # resident bias (x2 buf)
    vmem_limit = None
    if vmem_need > 12 * 1024 * 1024:
        vmem_limit = min(vmem_need + (4 << 20), 96 << 20)

    cost = pl.CostEstimate(
        flops=2 * M_pad * K * E_pad,
        transcendentals=0,
        bytes_accessed=(M_pad * K * cd_itemsize + K * E_pad * cd_itemsize
                        + E_pad * 4 + M_pad * E_pad * out_itemsize),
    )

    out2d = pl.pallas_call(
        _patch_embed_matmul_kernel,
        out_shape=jax.ShapeDtypeStruct((M_pad, E_pad), out_dtype),
        grid_spec=pltpu.PrefetchScalarGridSpec(
            num_scalar_prefetch=0,
            grid=grid,
            in_specs=[
                pl.BlockSpec((tm_eff, K), lambda i: (i, 0)),
                pl.BlockSpec((K, E_pad), lambda i: (0, 0)),  # VMEM-resident weight
                pl.BlockSpec((1, E_pad), lambda i: (0, 0)),  # VMEM-resident bias
            ],
            out_specs=pl.BlockSpec((tm_eff, E_pad), lambda i: (i, 0)),
        ),
        compiler_params=pltpu.CompilerParams(
            dimension_semantics=("parallel",),
            vmem_limit_bytes=vmem_limit),
        cost_estimate=cost,
    )(x2d, w2d, b2d)

    out2d = out2d[:M, :E]
    return out2d.reshape(B, num_patches, E)


def _reference(x, weight, bias, patch_size=4, compute_dtype=jnp.bfloat16):
    """Pure-JAX reference (lax.conv) evaluated on the same rounded operands."""
    p = patch_size
    xf = x.astype(compute_dtype).astype(jnp.float32)
    wf = weight.astype(compute_dtype).astype(jnp.float32)
    out = jax.lax.conv_general_dilated(
        xf, wf,
        window_strides=(p, p, p), padding="VALID",
        dimension_numbers=("NCDHW", "OIDHW", "NCDHW"),
        precision=jax.lax.Precision.HIGHEST)
    out = out + bias.astype(jnp.float32)[None, :, None, None, None]
    B, Eo = out.shape[0], out.shape[1]
    return out.reshape(B, Eo, -1).transpose(0, 2, 1)


if __name__ == "__main__":
    # Small shapes consistent with the module: voxel_size=16, patch_size=4,
    # in_chans=3, embed_dim=32 -> num_patches = 4*4*4 = 64, M = 128.
    B, C, V, P, E = 2, 3, 16, 4, 32

    key = jax.random.PRNGKey(0)
    kx, kw, kb = jax.random.split(key, 3)

    x = jax.random.normal(kx, (B, C, V, V, V), dtype=jnp.float32)
    # Deterministic "Conv3d" parameter init (kaiming-uniform-ish scale).
    fan_in = C * P * P * P
    bound = 1.0 / float(fan_in) ** 0.5
    weight = jax.random.uniform(kw, (E, C, P, P, P), minval=-bound, maxval=bound,
                                dtype=jnp.float32)
    bias = jax.random.uniform(kb, (E,), minval=-bound, maxval=bound,
                              dtype=jnp.float32)

    fn = jax.jit(functools.partial(patch_embed_voxel, patch_size=P))
    out = jax.block_until_ready(fn(x, weight, bias))

    ref = _reference(x, weight, bias, patch_size=P)
    assert out.shape == (B, (V // P) ** 3, E), out.shape
    assert out.dtype == jnp.bfloat16, out.dtype
    # bf16 MXU operands, f32 accumulate, bf16 output store vs f32 reference on
    # the same bf16-rounded operands -> differences are bf16 output rounding
    # plus accumulation order.
    out_f32 = out.astype(jnp.float32)
    assert jnp.allclose(out_f32, ref, atol=2e-2, rtol=2e-2), \
        float(jnp.max(jnp.abs(out_f32 - ref)))

    print("KERNEL_OK")
</pallas_src>

<mosaic_0001>
module attributes {stable_mosaic.version = 11 : i64} {
  func.func @_patch_embed_matmul_kernel(%arg0: i32, %arg1: memref<64x192xbf16, #tpu.memory_space<vmem>>, %arg2: memref<192x128xbf16, #tpu.memory_space<vmem>>, %arg3: memref<1x128xf32, #tpu.memory_space<vmem>>, %arg4: memref<64x128xbf16, #tpu.memory_space<vmem>>) attributes {dimension_semantics = [#tpu.dimension_semantics<parallel>], iteration_bounds = array<i64: 2>, scalar_prefetch = 0 : i64, scratch_operands = 0 : i64, tpu.core_type = #tpu.core_type<tc>, window_params = [{transform_indices = @transform_0, window_bounds = array<i64: 64, 192>}, {pipeline_mode = #tpu.pipeline_mode<synchronous>, transform_indices = @transform_1, window_bounds = array<i64: 192, 128>}, {pipeline_mode = #tpu.pipeline_mode<synchronous>, transform_indices = @transform_2, window_bounds = array<i64: 1, 128>}, {transform_indices = @transform_3, window_bounds = array<i64: 64, 128>}]} {
    %c0 = arith.constant 0 : index
    %c0_0 = arith.constant 0 : index
    %0 = vector.load %arg1[%c0, %c0_0] : memref<64x192xbf16, #tpu.memory_space<vmem>>, vector<64x192xbf16>
    %c0_1 = arith.constant 0 : index
    %c0_2 = arith.constant 0 : index
    %1 = vector.load %arg2[%c0_1, %c0_2] : memref<192x128xbf16, #tpu.memory_space<vmem>>, vector<192x128xbf16>
    %cst = arith.constant dense<0.000000e+00> : vector<64x128xf32>
    %2 = tpu.matmul %0, %1, %cst {dimension_numbers = #tpu.dot_dimension_numbers<[1], [0], [0], [1], [0, 0, 1, 1], [], []>} : vector<64x192xbf16>, vector<192x128xbf16>, vector<64x128xf32> -> vector<64x128xf32>
    %c0_3 = arith.constant 0 : index
    %c0_4 = arith.constant 0 : index
    %3 = vector.load %arg3[%c0_3, %c0_4] : memref<1x128xf32, #tpu.memory_space<vmem>>, vector<1x128xf32>
    %4 = vector.broadcast %3 : vector<1x128xf32> to vector<64x128xf32>
    %5 = arith.addf %2, %4 : vector<64x128xf32>
    %6 = arith.truncf %5 : vector<64x128xf32> to vector<64x128xbf16>
    %c0_5 = arith.constant 0 : index
    %c0_6 = arith.constant 0 : index
    %7 = vector.load %arg4[%c0_5, %c0_6] : memref<64x128xbf16, #tpu.memory_space<vmem>>, vector<64x128xbf16>
    tpu.vector_store %arg4[%c0_5, %c0_6], %6 {strides = array<i32>} : memref<64x128xbf16, #tpu.memory_space<vmem>>, vector<64x128xbf16>,
    return
  }
  func.func @transform_0(%arg0: i32) -> (i32, i32) {
    %c0_i32 = arith.constant 0 : i32
    %c0_i32_0 = arith.constant 0 : i32
    return %arg0, %c0_i32 : i32, i32
  }
  func.func @transform_1(%arg0: i32) -> (i32, i32) {
    %c0_i32 = arith.constant 0 : i32
    %c0_i32_0 = arith.constant 0 : i32
    %c0_i32_1 = arith.constant 0 : i32
    return %c0_i32, %c0_i32_0 : i32, i32
  }
  func.func @transform_2(%arg0: i32) -> (i32, i32) {
    %c0_i32 = arith.constant 0 : i32
    %c0_i32_0 = arith.constant 0 : i32
    %c0_i32_1 = arith.constant 0 : i32
    return %c0_i32, %c0_i32_0 : i32, i32
  }
  func.func @transform_3(%arg0: i32) -> (i32, i32) {
    %c0_i32 = arith.constant 0 : i32
    %c0_i32_0 = arith.constant 0 : i32
    return %arg0, %c0_i32 : i32, i32
  }
}

</mosaic_0001>

<bundles_post_ra>
// kernel: patch_embed_voxel.1
= control target key start
LH: loop header
LB: loop body
LE: loop exit
PB: predicated region body
PF: predicated region fallthrough
CT: control target
= control target key end

     0   :  { %s662_s12 = smov 0   ;;  %s760_s0 = inlined_call_operand.vmem [shape: bf16[128,192], index: 0, kind: input, shape index: {}]   ;;  %s761_s1 = inlined_call_operand.vmem [shape: bf16[192,128], index: 1, kind: input, shape index: {}]   ;;  %s762_s2 = inlined_call_operand.vmem [shape: f32[1,128], index: 2, kind: input, shape index: {}]   ;;  %s763_s3 = inlined_call_operand.vmem [shape: bf16[128,128], index: 3, kind: output, shape index: {}]  }
   0x1 LB: > { %s499_s13 = sadd.s32 4294967295, %s639_s12   ;;  %p503_p0 = scmp.ge.s32.totalorder %s639_s12, 1  ;;  %s639_s12 = sphi %s662_s12, %s13_s12  }
   0x2   : > { %p139_p1 = scmp.lt.s32.totalorder %s639_s12, 3 }
   0x4   : > { %p140_p2 = pnand %p503_p0, %p139_p1 }
   0x5   : > { %s504_s16 = sshll.u32 (!%p140_p2), %s499_s13, 3 }
   0x6   : > { %143 = sbr.rel (%p140_p2) target bundleno = 270 (0x10e), region = 32  ;;  %p165_p3 = scmp.lt.s32.totalorder (!%p140_p2), %s504_s16, 15 }
   0xb   : > { %v609_v0 = vld [vmem:[%s761_s1 + $0x38] sm:$0xff]   ;;  %v641_v1 = vmov 0   ;;  %v610_v2 = vld [vmem:[%s761_s1 + $0x30] sm:$0xff]   ;;  %s765_s16 = smov (!%p165_p3, %s504_s16), 15  ;;  %v611_v3 = vld [vmem:[%s761_s1 + $0x28] sm:$0xff]   ;;  %vm325_vm0 = vcmask 523264  }
   0xc   : > { %338 = vmatprep.subr.bf16.mxu0 %v641_v1  ;;  %576 = vmatprep.subr.bf16.mxu1 %v641_v1  ;;  %s544_s21 = sshll.u32 %s765_s16, 3  ;;  %v612_v4 = vld [vmem:[%s761_s1 + $0x20] sm:$0xff]   ;;  %v613_v6 = vld [vmem:[%s761_s1 + $0x18] sm:$0xff]   ;;  %v614_v8 = vld [vmem:[%s761_s1 + $0x10] sm:$0xff]   ;;  %s508_s20 = sshll.u32 %s765_s16, 2 }
   0xd   : > { %339 = vmatpush1.bf16.msra.mxu0 %v609_v0  ;;  %588 = vmatpush1.bf16.msra.mxu1 %v609_v0  ;;  %s694_s26 = scalar_lea.vmem %s760_s0, %s544_s21  ;;  %v615_v9 = vld [vmem:[%s761_s1 + $0x8] sm:$0xff]   ;;  %v616_v10 = vld [vmem:[%s761_s1] sm:$0xff]   ;;  %v617_v11 = vld [vmem:[%s761_s1 + $0x58] sm:$0xff]   ;;  %s175_s23 = scalar_lea.vmem %s763_s3, %s508_s20 }
   0xe   : > { %340 = vmatprep.subr.bf16.mxu0 %v641_v1  ;;  %577 = vmatprep.subr.bf16.mxu1 %v641_v1  ;;  %v623_v5 = vld [vmem:[%s694_s26 + $0x4] ss:$8 sps:$4 sm:$0xff]   ;;  %v618_v12 = vld [vmem:[%s761_s1 + $0x50] sm:$0xff]   ;;  %v621_v15 = vld [vmem:[%s694_s26] ss:$8 sps:$4 sm:$0xff]  }
   0xf   : > { %v626_v7 = vld [vmem:[%s694_s26 + $0x24] ss:$8 sps:$4 sm:$0xff]   ;;  %530 = vmatprep.mubr.msk.bf16.mxu0 %vm325_vm0, %v623_v5  ;;  %v624_v16 = vld [vmem:[%s694_s26 + $0x20] ss:$8 sps:$4 sm:$0xff]   ;;  %v627_v17 = vld [vmem:[%s694_s26 + $0x14] ss:$8 sps:$4 sm:$0xff]  }
  0x10   : > { %532 = vmatprep.mubr.msk.bf16.mxu1 %vm325_vm0, %v626_v7  ;;  %v619_v13 = vld [vmem:[%s761_s1 + $0x48] sm:$0xff]   ;;  %v620_v14 = vld [vmem:[%s761_s1 + $0x40] sm:$0xff]   ;;  %v629_v18 = vld [vmem:[%s694_s26 + $0x34] ss:$8 sps:$4 sm:$0xff]  }
  0x11   : > { %341 = vmatpush1.bf16.msra.mxu0 %v610_v2  ;;  %589 = vmatpush1.bf16.msra.mxu1 %v610_v2  ;;  %v631_v19 = vld [vmem:[%s694_s26 + $0x10] ss:$8 sps:$4 sm:$0xff]   ;;  %v509_v23 = vld [vmem:[%s762_s2] ss:$0 sm:$0xff] }
  0x12   : > { %342 = vmatprep.subr.bf16.mxu0 %v641_v1  ;;  %578 = vmatprep.subr.bf16.mxu1 %v641_v1  ;;  %v632_v20 = vld [vmem:[%s694_s26 + $0x30] ss:$8 sps:$4 sm:$0xff]  }
  0x15   : > { %343 = vmatpush1.bf16.msra.mxu0 %v611_v3  ;;  %590 = vmatpush1.bf16.msra.mxu1 %v611_v3 }
  0x16   : > { %344 = vmatprep.subr.bf16.mxu0 %v641_v1  ;;  %579 = vmatprep.subr.bf16.mxu1 %v641_v1 }
  0x19   : > { %345 = vmatpush1.bf16.msra.mxu0 %v612_v4  ;;  %591 = vmatpush1.bf16.msra.mxu1 %v612_v4 }
  0x1a   : > { %346 = vmatprep.subr.bf16.mxu0 %v641_v1  ;;  %580 = vmatprep.subr.bf16.mxu1 %v641_v1 }
  0x1d   : > { %347 = vmatpush1.bf16.msra.mxu0 %v613_v6  ;;  %592 = vmatpush1.bf16.msra.mxu1 %v613_v6 }
  0x1e   : > { %348 = vmatprep.subr.bf16.mxu0 %v641_v1  ;;  %581 = vmatprep.subr.bf16.mxu1 %v641_v1 }
  0x21   : > { %349 = vmatpush1.bf16.msra.mxu0 %v614_v8  ;;  %593 = vmatpush1.bf16.msra.mxu1 %v614_v8 }
  0x22   : > { %350 = vmatprep.subr.bf16.mxu0 %v641_v1  ;;  %582 = vmatprep.subr.bf16.mxu1 %v641_v1 }
  0x25   : > { %351 = vmatpush1.bf16.msra.mxu0 %v615_v9  ;;  %594 = vmatpush1.bf16.msra.mxu1 %v615_v9 }
  0x26   : > { %352 = vmatprep.subr.bf16.mxu0 %v641_v1  ;;  %583 = vmatprep.subr.bf16.mxu1 %v641_v1 }
  0x29   : > { %353 = vmatpush1.bf16.msra.mxu0 %v616_v10  ;;  %595 = vmatpush1.bf16.msra.mxu1 %v616_v10 }
  0x2a   : > { %362 = vmatprep.subr.bf16.mxu0 %v641_v1  ;;  %584 = vmatprep.subr.bf16.mxu1 %v641_v1 }
  0x2d   : > { %363 = vmatpush2.bf16.msra.mxu0 %v617_v11  ;;  %596 = vmatpush2.bf16.msra.mxu1 %v617_v11 }
  0x2e   : > { %364 = vmatprep.subr.bf16.mxu0 %v641_v1  ;;  %585 = vmatprep.subr.bf16.mxu1 %v641_v1 }
  0x31   : > { %365 = vmatpush2.bf16.msra.mxu0 %v618_v12  ;;  %597 = vmatpush2.bf16.msra.mxu1 %v618_v12 }
  0x32   : > { %366 = vmatprep.subr.bf16.mxu0 %v641_v1  ;;  %586 = vmatprep.subr.bf16.mxu1 %v641_v1 }
  0x35   : > { %367 = vmatpush2.bf16.msra.mxu0 %v619_v13  ;;  %598 = vmatpush2.bf16.msra.mxu1 %v619_v13 }
  0x36   : > { %368 = vmatprep.subr.bf16.mxu0 %v641_v1  ;;  %587 = vmatprep.subr.bf16.mxu1 %v641_v1 }
  0x39   : > { %369 = vmatpush2.bf16.msra.mxu0 %v620_v14  ;;  %599 = vmatpush2.bf16.msra.mxu1 %v620_v14 }
  0x3c   : > { %371 = vmatmul.mubr.bf16.vlgmr.msra.gmra.mxu0 %v621_v15  ;;  %387 = vmatmul.mubr.bf16.vlgmr.msra.gmra.mxu1 %v624_v16 }
  0x3d   : > { %531 = vmatprep.mubr.msk.bf16.mxu0 %vm325_vm0, %v627_v17  ;;  %533 = vmatprep.mubr.msk.bf16.mxu1 %vm325_vm0, %v629_v18 }
  0x44   : > { %379 = vmatmul.mubr.bf16.gmra.mxu0 %v631_v19  ;;  %395 = vmatmul.mubr.bf16.gmra.mxu1 %v632_v20 }
  0xfc   : > { %v372_v21 = vpop.f32.mrf.mxu0  ;;  %v388_v22 = vpop.f32.mrf.mxu1 }
  0xfd   : > { %v373_v28 = vadd.f32 %v509_v23, %v372_v21  ;;  %v389_v29 = vadd.f32 %v509_v23, %v388_v22 }
  0xfe   : > { %v374_v24 = vpop.f32.mrf.mxu0  ;;  %v390_v25 = vpop.f32.mrf.mxu1 }
 0x100   : > { %v375_v26 = vpop.f32.mrf.mxu0  ;;  %v391_v27 = vpop.f32.mrf.mxu1 }
 0x101   : > { %v376_v30 = vadd.f32 %v509_v23, %v375_v26  ;;  %v392_v31 = vadd.f32 %v509_v23, %v391_v27 }
 0x102   : > { %v377_v32 = vpop.f32.mrf.mxu0  ;;  %v393_v33 = vpop.f32.mrf.mxu1 }
 0x103   : > { %v556_v34 = vpack.c.bf16 %v376_v30, %v373_v28  ;;  %v566_v35 = vpack.c.bf16 %v392_v31, %v389_v29 }
 0x104   : > { %v380_v36 = vpop.f32.mrf.mxu0  ;;  %v396_v37 = vpop.f32.mrf.mxu1 }
 0x105   : > { %557 = vst [vmem:[%s175_s23] sm:$0xff] %v556_v34   ;;  %574 = vst [vmem:[%s175_s23 + $0x10] sm:$0xff] %v566_v35   ;;  %v381_v42 = vadd.f32 %v509_v23, %v380_v36  ;;  %v397_v43 = vadd.f32 %v509_v23, %v396_v37 }
 0x106   : > { %v382_v38 = vpop.f32.mrf.mxu0  ;;  %v398_v39 = vpop.f32.mrf.mxu1 }
 0x108   : > { %v383_v40 = vpop.f32.mrf.mxu0  ;;  %v399_v41 = vpop.f32.mrf.mxu1 }
 0x109   : > { %v384_v44 = vadd.f32 %v509_v23, %v383_v40  ;;  %v400_v45 = vadd.f32 %v509_v23, %v399_v41 }
 0x10a   : > { %v385_v46 = vpop.f32.mrf.mxu0  ;;  %v401_v47 = vpop.f32.mrf.mxu1 }
 0x10b   : > { %v561_v48 = vpack.c.bf16 %v384_v44, %v381_v42  ;;  %v571_v49 = vpack.c.bf16 %v400_v45, %v397_v43 }
 0x10d   : > { %573 = vst [vmem:[%s175_s23 + $0x8] sm:$0xff] %v561_v48   ;;  %575 = vst [vmem:[%s175_s23 + $0x18] sm:$0xff] %v571_v49  }
 0x10e PF: > { %s13_s12 = sadd.s32 1, %s639_s12  }
 0x10f   : > { %p10_p4 = scmp.ge.s32.totalorder %s13_s12, 4  }
 0x111   :  { %12 = sbr.rel (!%p10_p4) target bundleno = 1 (0x1), region = 62 }

</bundles_post_ra>
